<compile_context>
chip_gen: v7x
topology: tpu7x:2x2x1
jax: 0.10.0
libtpu: 0.0.40
codegen_flags: <defaults>
</compile_context>

<pallas_src>
import jax
import jax.numpy as jnp
from jax.experimental import pallas as pl
from jax.experimental.pallas import tpu as pltpu

BN_EPS = 1e-5


def hidden_block_kernel(x_ref, w_ref, b_ref, gamma_ref, beta_ref, mask_ref, o_ref):
    # ---- Linear: y = x @ W + b  (MXU, bf16 operands, f32 accumulation) ----
    x_bf = x_ref[...].astype(jnp.bfloat16)          # (B, D_in)
    w_bf = w_ref[...].astype(jnp.bfloat16)          # (D_in, TN)
    y = jnp.dot(x_bf, w_bf, preferred_element_type=jnp.float32) + b_ref[...]

    # ---- Activation (ReLU) ----
    y = jnp.maximum(y, 0.0)

    # ---- BatchNorm1d, training mode: batch mean / biased variance ----
    mean = jnp.mean(y, axis=0, keepdims=True)       # (1, TN)
    centered = y - mean                             # reused for var AND normalization
    var = jnp.mean(centered * centered, axis=0, keepdims=True)
    y_hat = centered * jax.lax.rsqrt(var + BN_EPS)
    y_hat = y_hat * gamma_ref[...] + beta_ref[...]

    # ---- Dropout: pre-scaled keep-mask (0 or 1/(1-p)) -> one multiply ----
    o_ref[...] = (y_hat * mask_ref[...]).astype(o_ref.dtype)


def hidden_block(x, w, b, gamma, beta, *, dropout_rate, rng_key, training=True):
    """x: (B, D_in) f32. w: (D_out, D_in) torch layout. b/gamma/beta: (D_out,)."""
    B, D_in = x.shape
    D_out = w.shape[0]

    LANES = 128
    Dp = ((D_out + LANES - 1) // LANES) * LANES     # lane-dense padded width
    for TN in (512, 256, 128):                      # biggest tile that divides Dp
        if Dp % TN == 0:
            break

    pad = Dp - D_out
    w_t = jnp.pad(w.T, ((0, 0), (0, pad)))                      # (D_in, Dp)
    b_p = jnp.pad(b.reshape(1, -1), ((0, 0), (0, pad)))         # (1, Dp)
    gamma_p = jnp.pad(gamma.reshape(1, -1), ((0, 0), (0, pad)))
    beta_p = jnp.pad(beta.reshape(1, -1), ((0, 0), (0, pad)))

    # Dropout keep-mask with the 1/(1-p) scale folded in.
    # TODO(synk): move to in-kernel TPU hardware PRNG (pltpu.prng_seed with
    # seed + pl.program_id(0)) to avoid the (B, Dp) mask HBM traffic; kept
    # host-side so the kernel also lowers under interpret mode.
    if training and dropout_rate > 0.0:
        keep = jax.random.bernoulli(rng_key, 1.0 - dropout_rate, (B, Dp))
        mask = keep.astype(jnp.float32) * jnp.float32(1.0 / (1.0 - dropout_rate))
    else:
        mask = jnp.ones((B, Dp), dtype=jnp.float32)

    grid = (Dp // TN,)

    # VMEM budget (f32, double-buffered) with headroom; capped for v7x's 64 MiB.
    itemsize = 4
    est = 2 * (D_in * TN + B * D_in + 2 * B * TN + 3 * TN) * itemsize
    vmem_limit = int(min(64 * 1024 * 1024, max(4 * 1024 * 1024, 4 * est)))

    cost = pl.CostEstimate(
        flops=2 * B * D_in * Dp,
        transcendentals=0,
        bytes_accessed=itemsize * (B * D_in + D_in * Dp + 3 * Dp + 2 * B * Dp),
    )

    out = pl.pallas_call(
        hidden_block_kernel,
        out_shape=jax.ShapeDtypeStruct((B, Dp), jnp.float32),
        grid=grid,
        in_specs=[
            pl.BlockSpec((B, D_in), lambda j: (0, 0)),    # x: resident across tiles
            pl.BlockSpec((D_in, TN), lambda j: (0, j)),   # W tile
            pl.BlockSpec((1, TN), lambda j: (0, j)),      # bias
            pl.BlockSpec((1, TN), lambda j: (0, j)),      # gamma
            pl.BlockSpec((1, TN), lambda j: (0, j)),      # beta
            pl.BlockSpec((B, TN), lambda j: (0, j)),      # dropout mask
        ],
        out_specs=pl.BlockSpec((B, TN), lambda j: (0, j)),
        compiler_params=pltpu.CompilerParams(
            dimension_semantics=("parallel",),
            vmem_limit_bytes=vmem_limit,
        ),
        cost_estimate=cost,
    )(x, w_t, b_p, gamma_p, beta_p, mask)

    return out[:, :D_out]


if __name__ == "__main__":
    # Small shapes consistent with the module: batch=8, input_dim=64, output_dim=384
    # (384 -> 3 lane-dense tiles of 128, exercising the D_out grid).
    B, D_IN, D_OUT = 8, 64, 384
    DROPOUT_RATE = 0.1

    key = jax.random.PRNGKey(0)
    k_x, k_w, k_b, k_drop = jax.random.split(key, 4)

    x = jax.random.normal(k_x, (B, D_IN), dtype=jnp.float32)

    # torch.nn.Linear default init: U(-1/sqrt(D_in), 1/sqrt(D_in)).
    bound = 1.0 / (D_IN ** 0.5)
    w = jax.random.uniform(k_w, (D_OUT, D_IN), dtype=jnp.float32,
                           minval=-bound, maxval=bound)
    b = jax.random.uniform(k_b, (D_OUT,), dtype=jnp.float32,
                           minval=-bound, maxval=bound)
    gamma = jnp.ones((D_OUT,), dtype=jnp.float32)    # BatchNorm1d weight
    beta = jnp.zeros((D_OUT,), dtype=jnp.float32)    # BatchNorm1d bias

    out = hidden_block(x, w, b, gamma, beta,
                       dropout_rate=DROPOUT_RATE, rng_key=k_drop)
    jax.block_until_ready(out)

    assert out.shape == (B, D_OUT) and out.dtype == jnp.float32
    assert bool(jnp.all(jnp.isfinite(out)))
    print("KERNEL_OK")
</pallas_src>

<mosaic_0001>
module attributes {stable_mosaic.version = 11 : i64} {
  func.func @hidden_block_kernel(%arg0: i32, %arg1: memref<8x64xf32, #tpu.memory_space<vmem>>, %arg2: memref<64x128xf32, #tpu.memory_space<vmem>>, %arg3: memref<1x128xf32, #tpu.memory_space<vmem>>, %arg4: memref<1x128xf32, #tpu.memory_space<vmem>>, %arg5: memref<1x128xf32, #tpu.memory_space<vmem>>, %arg6: memref<8x128xf32, #tpu.memory_space<vmem>>, %arg7: memref<8x128xf32, #tpu.memory_space<vmem>>) attributes {dimension_semantics = [#tpu.dimension_semantics<parallel>], iteration_bounds = array<i64: 3>, scalar_prefetch = 0 : i64, scratch_operands = 0 : i64, tpu.core_type = #tpu.core_type<tc>, window_params = [{pipeline_mode = #tpu.pipeline_mode<synchronous>, transform_indices = @transform_0, window_bounds = array<i64: 8, 64>}, {transform_indices = @transform_1, window_bounds = array<i64: 64, 128>}, {transform_indices = @transform_2, window_bounds = array<i64: 1, 128>}, {transform_indices = @transform_3, window_bounds = array<i64: 1, 128>}, {transform_indices = @transform_4, window_bounds = array<i64: 1, 128>}, {transform_indices = @transform_5, window_bounds = array<i64: 8, 128>}, {transform_indices = @transform_6, window_bounds = array<i64: 8, 128>}]} {
    %c0 = arith.constant 0 : index
    %c0_0 = arith.constant 0 : index
    %0 = vector.load %arg1[%c0, %c0_0] : memref<8x64xf32, #tpu.memory_space<vmem>>, vector<8x64xf32>
    %1 = arith.truncf %0 : vector<8x64xf32> to vector<8x64xbf16>
    %c0_1 = arith.constant 0 : index
    %c0_2 = arith.constant 0 : index
    %2 = vector.load %arg2[%c0_1, %c0_2] : memref<64x128xf32, #tpu.memory_space<vmem>>, vector<64x128xf32>
    %3 = arith.truncf %2 : vector<64x128xf32> to vector<64x128xbf16>
    %cst = arith.constant dense<0.000000e+00> : vector<8x128xf32>
    %4 = tpu.matmul %1, %3, %cst {dimension_numbers = #tpu.dot_dimension_numbers<[1], [0], [0], [1], [0, 0, 1, 1], [], []>} : vector<8x64xbf16>, vector<64x128xbf16>, vector<8x128xf32> -> vector<8x128xf32>
    %c0_3 = arith.constant 0 : index
    %c0_4 = arith.constant 0 : index
    %5 = vector.load %arg3[%c0_3, %c0_4] : memref<1x128xf32, #tpu.memory_space<vmem>>, vector<1x128xf32>
    %6 = vector.broadcast %5 : vector<1x128xf32> to vector<8x128xf32>
    %7 = arith.addf %4, %6 : vector<8x128xf32>
    %cst_5 = arith.constant 0.000000e+00 : f32
    %8 = vector.broadcast %cst_5 : f32 to vector<8x128xf32>
    %9 = arith.maximumf %7, %8 : vector<8x128xf32>
    %cst_6 = arith.constant dense<0.000000e+00> : vector<128xf32>
    %10 = vector.multi_reduction <add>, %9, %cst_6 [0] : vector<8x128xf32> to vector<128xf32>
    %11 = vector.shape_cast %10 : vector<128xf32> to vector<1x128xf32>
    %cst_7 = arith.constant 8.000000e+00 : f32
    %12 = vector.broadcast %cst_7 : f32 to vector<1x128xf32>
    %13 = arith.divf %11, %12 : vector<1x128xf32>
    %14 = vector.broadcast %13 : vector<1x128xf32> to vector<8x128xf32>
    %15 = arith.subf %9, %14 : vector<8x128xf32>
    %16 = arith.mulf %15, %15 : vector<8x128xf32>
    %cst_8 = arith.constant dense<0.000000e+00> : vector<128xf32>
    %17 = vector.multi_reduction <add>, %16, %cst_8 [0] : vector<8x128xf32> to vector<128xf32>
    %18 = vector.shape_cast %17 : vector<128xf32> to vector<1x128xf32>
    %cst_9 = arith.constant 8.000000e+00 : f32
    %19 = vector.broadcast %cst_9 : f32 to vector<1x128xf32>
    %20 = arith.divf %18, %19 : vector<1x128xf32>
    %cst_10 = arith.constant 9.99999974E-6 : f32
    %21 = vector.broadcast %cst_10 : f32 to vector<1x128xf32>
    %22 = arith.addf %20, %21 : vector<1x128xf32>
    %23 = math.rsqrt %22 : vector<1x128xf32>
    %24 = vector.broadcast %23 : vector<1x128xf32> to vector<8x128xf32>
    %25 = arith.mulf %15, %24 : vector<8x128xf32>
    %c0_11 = arith.constant 0 : index
    %c0_12 = arith.constant 0 : index
    %26 = vector.load %arg4[%c0_11, %c0_12] : memref<1x128xf32, #tpu.memory_space<vmem>>, vector<1x128xf32>
    %27 = vector.broadcast %26 : vector<1x128xf32> to vector<8x128xf32>
    %28 = arith.mulf %25, %27 : vector<8x128xf32>
    %c0_13 = arith.constant 0 : index
    %c0_14 = arith.constant 0 : index
    %29 = vector.load %arg5[%c0_13, %c0_14] : memref<1x128xf32, #tpu.memory_space<vmem>>, vector<1x128xf32>
    %30 = vector.broadcast %29 : vector<1x128xf32> to vector<8x128xf32>
    %31 = arith.addf %28, %30 : vector<8x128xf32>
    %c0_15 = arith.constant 0 : index
    %c0_16 = arith.constant 0 : index
    %32 = vector.load %arg6[%c0_15, %c0_16] : memref<8x128xf32, #tpu.memory_space<vmem>>, vector<8x128xf32>
    %33 = arith.mulf %31, %32 : vector<8x128xf32>
    %c0_17 = arith.constant 0 : index
    %c0_18 = arith.constant 0 : index
    %34 = vector.load %arg7[%c0_17, %c0_18] : memref<8x128xf32, #tpu.memory_space<vmem>>, vector<8x128xf32>
    tpu.vector_store %arg7[%c0_17, %c0_18], %33 {strides = array<i32>} : memref<8x128xf32, #tpu.memory_space<vmem>>, vector<8x128xf32>,
    return
  }
  func.func @transform_0(%arg0: i32) -> (i32, i32) {
    %c0_i32 = arith.constant 0 : i32
    %c0_i32_0 = arith.constant 0 : i32
    %c0_i32_1 = arith.constant 0 : i32
    return %c0_i32, %c0_i32_0 : i32, i32
  }
  func.func @transform_1(%arg0: i32) -> (i32, i32) {
    %c0_i32 = arith.constant 0 : i32
    %c0_i32_0 = arith.constant 0 : i32
    return %c0_i32, %arg0 : i32, i32
  }
  func.func @transform_2(%arg0: i32) -> (i32, i32) {
    %c0_i32 = arith.constant 0 : i32
    %c0_i32_0 = arith.constant 0 : i32
    return %c0_i32, %arg0 : i32, i32
  }
  func.func @transform_3(%arg0: i32) -> (i32, i32) {
    %c0_i32 = arith.constant 0 : i32
    %c0_i32_0 = arith.constant 0 : i32
    return %c0_i32, %arg0 : i32, i32
  }
  func.func @transform_4(%arg0: i32) -> (i32, i32) {
    %c0_i32 = arith.constant 0 : i32
    %c0_i32_0 = arith.constant 0 : i32
    return %c0_i32, %arg0 : i32, i32
  }
  func.func @transform_5(%arg0: i32) -> (i32, i32) {
    %c0_i32 = arith.constant 0 : i32
    %c0_i32_0 = arith.constant 0 : i32
    return %c0_i32, %arg0 : i32, i32
  }
  func.func @transform_6(%arg0: i32) -> (i32, i32) {
    %c0_i32 = arith.constant 0 : i32
    %c0_i32_0 = arith.constant 0 : i32
    return %c0_i32, %arg0 : i32, i32
  }
}

</mosaic_0001>

<bundles_post_ra>
// kernel: tpu_custom_call.1
= control target key start
LH: loop header
LB: loop body
LE: loop exit
PB: predicated region body
PF: predicated region fallthrough
CT: control target
= control target key end

     0   :  { %s1170_s0 = inlined_call_operand.hbm [shape: f32[8,64], index: 0, kind: input, shape index: {}]   ;;  %s1171_s1 = inlined_call_operand.hbm [shape: f32[64,384], index: 1, kind: input, shape index: {}]   ;;  %s1172_s2 = inlined_call_operand.vmem [shape: f32[1,384], index: 2, kind: input, shape index: {}]   ;;  %s1173_s3 = inlined_call_operand.vmem [shape: f32[1,384], index: 3, kind: input, shape index: {}]   ;;  %s1174_s4 = inlined_call_operand.vmem [shape: f32[1,384], index: 4, kind: input, shape index: {}]   ;;  %s1175_s5 = inlined_call_operand.hbm [shape: f32[8,384], index: 5, kind: input, shape index: {}]   ;;  %s1176_s6 = inlined_call_operand.hbm [shape: f32[8,384], index: 6, kind: output, shape index: {}]  }
   0x1   :  { %1182 = sst [smem:[#allocation12_spill]] %s1171_s1 }
   0x2   :  { %1183 = sst [smem:[#allocation13_spill]] %s1175_s5 }
   0x3   :  { %11 = vsyncpa [#allocation3], 0 }
   0x4   :  { %12 = vsyncpa [#allocation6], 0 }
   0x5   :  { %14 = vsyncpa [#allocation6 + $0x1], 0 }
   0x6   :  { %15 = vsyncpa [#allocation4], 0 }
   0x7   :  { %17 = vsyncpa [#allocation4 + $0x1], 0  ;;  %s918_s21 = smov 0   ;;  %s920_s22 = smov 0  }
   0x8   :  { %s922_s23 = smov 0   ;;  %s924_s24 = smov 0  }
   0x9 LB: > { %s939_s25 = sadd.s32 1, %s872_s24   ;;  %s51_s26 = sadd.s32 1, %s868_s23  ;;  %s872_s24 = sphi %s924_s24, %s1202_s24   ;;  %s868_s23 = sphi %s922_s23, %s1201_s23   ;;  %s864_s22 = sphi %s920_s22, %s1200_s22   ;;  %s860_s21 = sphi %s918_s21, %s1199_s21  }
   0xa   : > { %s48_s27 = ssub.s32 %s872_s24, %s939_s25  ;;  %p58_p0 = scmp.ne.s32.totalorder %s868_s23, %s864_s22 }
   0xb   : > { %p49_p1 = scmp.eq.s32.totalorder %s48_s27, 0  ;;  %p59_p2 = scmp.eq.s32.totalorder %s872_s24, 0 }
   0xc   : > { %p671_p3 = scmp.lt.s32.totalorder %s872_s24, 3  ;;  %s229_s29 = sand.u32 1, %s872_s24  }
   0xd   : > { %s949_s28 = scalar_select %p49_p1, %s868_s23, %s51_s26  }
   0xe   : > { %p60_p4 = por %p59_p2, %p58_p0  ;;  %s231_s30 = sand.u32 1, %s868_s23  }
   0xf   : > { %s611_s7 = sshll.u32 %s231_s30, 6  ;;  %s612_s8 = sshll.u32 %s872_s24, 7 }
  0x10   : > { %s1184_s1 = sld [smem:[#allocation12_spill]]  ;;  %s233_s12 = scalar_lea.vmem [#allocation5], %s611_s7 }
  0x11   : > { %s239_s13 = sshll.u32 %s233_s12, 4  ;;  %p966_p5 = pnand %p671_p3, %p60_p4  ;;  %s970_s13 = int_to_ptr.vmem [resolvable:$true] %s239_s13 }
  0x12   : > { %s972_s15 = scalar_lea.sflag [#allocation6], %s229_s29 }
  0x13   : > { %p716_p7 = pneg %p966_p5 }
  0x16   : > { %s964_s11 = scalar_lea.hbm %s1184_s1, %s612_s8  ;;  %s719_s19 = scalar_lea.hbm %s1184_s1, 3072 }
  0x17   : > { %s714_s16 = scalar_lea.hbm %s964_s11, 1024  ;;  %p720_p10 = scmp.lt.u32.totalorder %s964_s11, %s1184_s1 }
  0x18   : > { %p715_p6 = scmp.ne.s32.totalorder %s964_s11, %s714_s16  ;;  %p721_p11 = scmp.lt.u32.totalorder %s719_s19, %s714_s16 }
  0x19   : > { %p723_p13 = scmp.lt.u32.totalorder %s714_s16, %s964_s11 }
  0x1a   : > { %p717_p8 = pnand %p716_p7, %p715_p6  ;;  %p722_p12 = por %p721_p11, %p720_p10 }
  0x1c   : > { %p718_p9 = pneg %p717_p8  ;;  %p724_p1 = por %p723_p13, %p722_p12 }
  0x1e   : > { %p725_p2 = pnand %p724_p1, %p718_p9 }
  0x20   : > { %728 = shalt.err (!%p725_p2)
}
  0x21   : > { %s729_s27 = scalar_lea.vmem %s970_s13, 1024  ;;  %s874_s29 = smov [#allocation5]  }
  0x22   : > { %p730_p3 = scmp.ne.s32.totalorder %s970_s13, %s729_s27  ;;  %s734_s7 = sshll.u32 %s874_s29, 4  ;;  %s735_s7 = int_to_ptr.vmem [resolvable:$false] %s734_s7 }
  0x23   : > { %s736_s9 = scalar_lea.vmem %s735_s7, 2048  ;;  %p737_p8 = scmp.lt.s32.totalorder %s970_s13, %s735_s7 }
  0x24   : > { %p732_p4 = pnand %p730_p3, %p716_p7  ;;  %p738_p10 = scmp.lt.s32.totalorder %s736_s9, %s729_s27 }
  0x26   : > { %p733_p6 = pneg %p732_p4  ;;  %p739_p11 = por %p738_p10, %p737_p8 }
  0x28   : > { %p740_p12 = pnand %p739_p11, %p733_p6 }
  0x2a   : > { %743 = shalt.err (!%p740_p12)
}
  0x2b   : > { %s875_s10 = smov 384   ;;  %s876_s12 = smov 128  }
  0x2c   : > { %s877_s16 = smov 8   ;;  %s1001_s17 = sadd.s32 4294967295, %s872_s24  }
  0x2d   : > { %662 = dma.hbm_to_vmem [thread:$0]  (!%p966_p5), %s964_s11, 1024, %s970_s13, %s972_s15, %s875_s10, %s876_s12, %s877_s16  }
  0x2e   : > { %s607_s18 = sadd.s32 4294967294, %s872_s24   ;;  %p64_p9 = scmp.ne.s32.totalorder %s864_s22, %s860_s21 }
  0x2f   : > { %p1177_p13 = scmp.eq.s32.totalorder %s1001_s17, 0  ;;  %p192_p1 = scmp.eq.s32.totalorder %s1001_s17, 2 }
  0x30   : > { %p198_p2 = scmp.eq.s32.totalorder %s607_s18, 2  ;;  %p608_p3 = scmp.ge.s32.totalorder %s872_s24, 1 }
  0x31   : > { %p1011_p4 = por %p1177_p13, %p64_p9  ;;  %p1018_p6 = por %p192_p1, %p58_p0 }
  0x32   : > { %p1022_p8 = por %p198_p2, %p64_p9  ;;  %p205_p10 = scmp.lt.s32.totalorder %s872_s24, 4 }
  0x33   : > { %s1186_s19 = scalar_select %p1011_p4, 1, 0 }
  0x34   : > { %s1187_s11 = scalar_select %p1018_p6, 1, 0 }
  0x35   : > { %s1188_s13 = scalar_select %p1022_p8, 1, 0 }
  0x36   : > { %p1027_p11 = pnand %p608_p3, %p205_p10  ;;  %s878_s26 = smov [#allocation2]  }
  0x37   : > { %s218_s27 = sshll.u32 %s878_s26, 4  ;;  %s613_s29 = sshll.u32 %s231_s30, 3  ;;  %s1031_s27 = int_to_ptr.vmem [resolvable:$true] %s218_s27 }
  0x38   : > { %s1189_s20 = scalar_select %p1027_p11, 1, 0 }
  0x39   : > { %p655_p0 = pneg %p1027_p11  ;;  %s1190_s5 = sld [smem:[#allocation13_spill]] }
  0x3a   : > { %s271_s12 = scalar_lea.vmem [#allocation7], %s613_s29 }
  0x3b   : > { %s278_s16 = sshll.u32 %s271_s12, 4  ;;  %p1046_p12 = pnand %p655_p0, %p1177_p13  ;;  %s279_s16 = int_to_ptr.vmem [resolvable:$true] %s278_s16 }
  0x3d   : > { %s1191_s18 = scalar_select %p1046_p12, 1, 0 }
  0x3f   : > { %s1042_s10 = scalar_lea.hbm %s1190_s5, %s612_s8  ;;  %s749_s7 = scalar_lea.hbm %s1190_s5, 384 }
  0x40   : > { %s744_s30 = scalar_lea.hbm %s1042_s10, 128  ;;  %p750_p3 = scmp.lt.u32.totalorder %s1042_s10, %s1190_s5 }
  0x41   : > { %p745_p9 = scmp.ne.s32.totalorder %s1042_s10, %s744_s30  ;;  %p751_p10 = scmp.lt.u32.totalorder %s749_s7, %s744_s30 }
  0x42   : > { %p753_p13 = scmp.lt.u32.totalorder %s744_s30, %s1042_s10 }
  0x43   : > { %p747_p1 = pnand %p745_p9, %p716_p7  ;;  %p752_p0 = por %p751_p10, %p750_p3 }
  0x45   : > { %p748_p2 = pneg %p747_p1  ;;  %p754_p8 = por %p753_p13, %p752_p0 }
  0x47   : > { %p755_p6 = pnand %p754_p8, %p748_p2 }
  0x49   : > { %758 = shalt.err (!%p755_p6)
}
  0x4a   : > { %s759_s29 = scalar_lea.vmem %s279_s16, 128  ;;  %s879_s12 = smov [#allocation7]  }
  0x4b   : > { %p760_p4 = scmp.ne.s32.totalorder %s279_s16, %s759_s29  ;;  %s764_s8 = sshll.u32 %s879_s12, 4  ;;  %s765_s8 = int_to_ptr.vmem [resolvable:$false] %s764_s8 }
  0x4c   : > { %s766_s26 = scalar_lea.vmem %s765_s8, 256  ;;  %p767_p11 = scmp.lt.s32.totalorder %s279_s16, %s765_s8 }
  0x4d   : > { %p762_p9 = pnand %p760_p4, %p716_p7  ;;  %p768_p12 = scmp.lt.s32.totalorder %s766_s26, %s759_s29 }
  0x4f   : > { %p763_p1 = pneg %p762_p9  ;;  %p769_p3 = por %p768_p12, %p767_p11 }
  0x51   : > { %p770_p10 = pnand %p769_p3, %p763_p1 }
  0x53   : > { %773 = shalt.err (!%p770_p10)
}
  0x54   : > { %665 = dma.hbm_to_vmem [thread:$0]  (!%p966_p5), %s1042_s10, 128, %s279_s16, %s972_s15  }
  0x55   : > { %s774_s7 = scalar_lea.hbm %s1170_s0, 128  ;;  %p1192_p13 = scmp.ne.s32.totalorder %s1191_s18, 0 }
  0x56   : > { %p775_p7 = scmp.ne.s32.totalorder %s1170_s0, %s774_s7  ;;  %p781_p11 = scmp.lt.u32.totalorder %s774_s7, %s1170_s0 }
  0x57   : > { %p776_p4 = pneg %p1192_p13 }
  0x59   : > { %p777_p6 = pnand %p776_p4, %p775_p7 }
  0x5b   : > { %p778_p8 = pneg %p777_p6 }
  0x5d   : > { %p783_p12 = pnand %p781_p11, %p778_p8 }
  0x5f   : > { %786 = shalt.err (!%p783_p12)
}
  0x60   : > { %s787_s14 = scalar_lea.vmem %s1031_s27, 128  ;;  %p795_p9 = scmp.lt.s32.totalorder %s1031_s27, %s1031_s27 }
  0x61   : > { %p788_p5 = scmp.ne.s32.totalorder %s1031_s27, %s787_s14  ;;  %p796_p1 = scmp.lt.s32.totalorder %s787_s14, %s787_s14 }
  0x63   : > { %p790_p2 = pnand %p788_p5, %p776_p4  ;;  %p797_p3 = por %p796_p1, %p795_p9 }
  0x65   : > { %p791_p0 = pneg %p790_p2 }
  0x67   : > { %p798_p10 = pnand %p797_p3, %p791_p0 }
  0x69   : > { %801 = shalt.err (!%p798_p10)
}
  0x6a   : > { %658 = dma.hbm_to_vmem [thread:$0]  (!%p1192_p13), %s1170_s0, 128, %s1031_s27, [#allocation3]  }
  0x6b   : > { %p1193_p7 = scmp.ne.s32.totalorder %s1189_s20, 0 }
  0x6c   : > { %p1194_p6 = scmp.eq.s32.totalorder (!%p1193_p7), %s1001_s17, 0 }
  0x6d   : > { %287 = sbr.rel (%p1193_p7) target bundleno = 423 (0x1a7), region = 44 }
  0x74   : > { %847 = dma.done.wait (%p1194_p6), [#allocation3], 128   ;;  %p1195_p4 = pmov %p1194_p6 }
  0x75   : > { %s293_s10 = sand.u32 1, %s1001_s17   ;;  %s1099_s16 = sand.u32 1, %s864_s22  }
  0x76   : > { %849 = vsyncadd (%p1195_p4), [#allocation3], 4294967168  ;;  %s617_s18 = sshll.u32 %s1099_s16, 6  ;;  %s294_s8 = scalar_lea.sflag [#allocation6], %s293_s10 }
  0x77   : > { %s297_s26 = scalar_lea.vmem [#allocation5], %s617_s18  ;;  %p1196_p13 = scmp.ne.s32.totalorder %s1186_s19, 0 }
  0x79   : > { %851 = dma.done.wait (%p1196_p13), %s294_s8, 1152  }
  0x7a   : > { %853 = vsyncadd (%p1196_p13), %s294_s8, 4294966144  ;;  %v880_v0 = vmov 0.0   ;;  %vm881_vm0 = vmmov 0   ;;  %v361_v1 = vld [vmem:[%s297_s26] sm:$0xff]  ;;  %v362_v2 = vld [vmem:[%s297_s26 + $0x8] sm:$0xff]  ;;  %vm380_vm1 = vcmask 523264  }
  0x7b   : > { %633 = vmatprep.subr.bf16.mxu0 %v880_v0  ;;  %641 = vmatprep.mubr.msk.bf16.mxu0 %vm881_vm0, %v880_v0  ;;  %v363_v3 = vld [vmem:[%s297_s26 + $0x10] sm:$0xff]  ;;  %v369_v4 = vpack.c.bf16 %v362_v2, %v361_v1  ;;  %v364_v5 = vld [vmem:[%s297_s26 + $0x18] sm:$0xff]  ;;  %v365_v7 = vld [vmem:[%s297_s26 + $0x20] sm:$0xff]  ;;  %p349_p8 = scmp.lt.s32.totalorder %s1001_s17, 2  ;;  %s618_s29 = sshll.u32 %s1099_s16, 3 }
  0x7c   : > { %v370_v6 = vpack.c.bf16 %v364_v5, %v363_v3  ;;  %v366_v8 = vld [vmem:[%s297_s26 + $0x28] sm:$0xff]  ;;  %v367_v10 = vld [vmem:[%s297_s26 + $0x30] sm:$0xff]  ;;  %v368_v11 = vld [vmem:[%s297_s26 + $0x38] sm:$0xff]  ;;  %s306_s15 = scalar_lea.vmem [#allocation7], %s618_s29  ;;  %s625_s10 = sshll.u32 %s1001_s17, 7 }
  0x7d   : > { %634 = vmatpush3.bf16.msra.mxu0 %v369_v4  ;;  %v371_v9 = vpack.c.bf16 %v366_v8, %v365_v7  ;;  %v372_v12 = vpack.c.bf16 %v368_v11, %v367_v10  ;;  %v359_v13 = vld [vmem:[#allocation2] sm:$0xff]  ;;  %s1108_s19 = scalar_select %p349_p8, %s1001_s17, 2  ;;  %v461_v44 = vld [vmem:[%s306_s15] sm:$0xff] }
  0x7e   : > { %635 = vmatprep.subr.bf16.mxu0 %v880_v0  ;;  %v360_v14 = vpack.c.bf16 %v359_v13, %v359_v13  ;;  %s348_s18 = scalar_lea.vmem [#allocation8], %s618_s29  ;;  %s1127_s27 = scalar_lea.hbm %s1176_s6, %s625_s10 }
  0x7f   : > { %s351_s1 = scalar_lea.vmem %s1172_s2, %s1108_s19  ;;  %s354_s9 = scalar_lea.vmem %s1173_s3, %s1108_s19 }
  0x80   : > { %v620_v15 = vld [vmem:[%s351_s1] ss:$0 sm:$0xff]  ;;  %s357_s5 = scalar_lea.vmem %s1174_s4, %s1108_s19  ;;  %s478_s8 = sshll.u32 %s348_s18, 4  ;;  %s1129_s8 = int_to_ptr.vmem [resolvable:$true] %s478_s8 }
  0x81   : > { %636 = vmatpush3.bf16.msra.mxu0 %v370_v6  ;;  %v622_v40 = vld [vmem:[%s354_s9] ss:$0 sm:$0xff]  ;;  %s465_s19 = scalar_lea.sflag [#allocation4], %s1099_s16  ;;  %s802_s1 = scalar_lea.vmem %s1129_s8, 128 }
  0x82   : > { %637 = vmatprep.subr.bf16.mxu0 %v880_v0  ;;  %v623_v42 = vld [vmem:[%s357_s5] ss:$0 sm:$0xff]  ;;  %p803_p11 = scmp.ne.s32.totalorder %s1129_s8, %s802_s1  ;;  %p1197_p12 = scmp.ne.s32.totalorder %s1187_s11, 0 }
  0x83   : > { %s882_s17 = smov [#allocation8]  }
  0x84   : > { %p804_p5 = pnand %p803_p11, %p1197_p12  ;;  %s806_s30 = sshll.u32 %s882_s17, 4  ;;  %s807_s30 = int_to_ptr.vmem [resolvable:$false] %s806_s30 }
  0x85   : > { %638 = vmatpush3.bf16.msra.mxu0 %v371_v9  ;;  %s808_s7 = scalar_lea.vmem %s807_s30, 256  ;;  %p809_p0 = scmp.lt.s32.totalorder %s1129_s8, %s807_s30 }
  0x86   : > { %639 = vmatprep.subr.bf16.mxu0 %v880_v0  ;;  %p805_p2 = pneg %p804_p5  ;;  %p810_p9 = scmp.lt.s32.totalorder %s808_s7, %s802_s1 }
  0x88   : > { %p811_p1 = por %p810_p9, %p809_p0 }
  0x89   : > { %640 = vmatpush3.bf16.msra.mxu0 %v372_v12 }
  0x8a   : > { %p812_p3 = pnand %p811_p1, %p805_p2 }
  0x8c   : > { %642 = vmatmul.mubr.msk.bf16.vlgmr.msra.gmra.mrb[0].mxu0 %vm380_vm1, %v360_v14 }
 0x15f   : > { %v418_v16 = vpop.f32.mrb[0].mxu0 }
 0x160   : > { %v419_v17 = vadd.f32 %v620_v15, %v418_v16  ;;  %v643_v18 = vpop.f32.mrb[1].mxu0 }
 0x161   : > { %v421_v19 = vpop.f32.mrb[2].mxu0 }
 0x162   : > { %v424_v20 = vmax.f32 %v419_v17, 0.0  ;;  %v644_v21 = vpop.f32.mrb[3].mxu0 }
 0x164   : > { %v425_v22 = vrot.slane %v424_v20, 4 }
 0x166   : > { %v426_v23 = vadd.f32 %v425_v22, %v424_v20 }
 0x168   : > { %v427_v24 = vrot.slane %v426_v23, 2 }
 0x16a   : > { %v428_v25 = vadd.f32 %v427_v24, %v426_v23 }
 0x16c   : > { %v429_v26 = vrot.slane %v428_v25, 1 }
 0x16e   : > { %v430_v27 = vadd.f32 %v429_v26, %v428_v25 }
 0x170   : > { %v432_v28 = vmul.f32 0.125, %v430_v27 }
 0x172   : > { %v433_v29 = vsub.f32 %v424_v20, %v432_v28 }
 0x174   : > { %v434_v30 = vmul.f32 %v433_v29, %v433_v29 }
 0x176   : > { %v435_v31 = vrot.slane %v434_v30, 4 }
 0x178   : > { %v436_v32 = vadd.f32 %v435_v31, %v434_v30 }
 0x17a   : > { %v437_v33 = vrot.slane %v436_v32, 2 }
 0x17c   : > { %v438_v34 = vadd.f32 %v437_v33, %v436_v32 }
 0x17e   : > { %v439_v35 = vrot.slane %v438_v34, 1 }
 0x180   : > { %v440_v36 = vadd.f32 %v439_v35, %v438_v34 }
 0x182   : > { %v441_v37 = vmul.f32 0.125, %v440_v36 }
 0x184   : > { %v442_v38 = vadd.f32 1e-05, %v441_v37 }
 0x186   : > { %712 = vrsqrt.f32 %v442_v38 }
 0x190   : > { %v713_v39 = vpop.eup %712 }
 0x191   : > { %v444_v41 = vmul.f32 %v713_v39, %v433_v29 }
 0x193   : > { %v452_v43 = vmul.f32 %v622_v40, %v444_v41 }
 0x195   : > { %v460_v45 = vadd.f32 %v623_v42, %v452_v43 }
 0x197   : > { %v462_v46 = vmul.f32 %v461_v44, %v460_v45 }
 0x199   : > { %463 = vst [vmem:[%s348_s18] sm:$0xff] %v462_v46 }
 0x19a   : > { %815 = shalt.err (!%p812_p3)
}
 0x19b   : > { %s816_s16 = scalar_lea.hbm %s1127_s27, 128  ;;  %s820_s12 = scalar_lea.hbm %s1176_s6, 384 }
 0x19c   : > { %p817_p10 = scmp.ne.s32.totalorder %s1127_s27, %s816_s16  ;;  %p821_p4 = scmp.lt.u32.totalorder %s1127_s27, %s1176_s6 }
 0x19d   : > { %p822_p13 = scmp.lt.u32.totalorder %s820_s12, %s816_s16  ;;  %p824_p11 = scmp.lt.u32.totalorder %s816_s16, %s1127_s27 }
 0x19e   : > { %p818_p7 = pnand %p817_p10, %p1197_p12 }
 0x19f   : > { %p823_p8 = por %p822_p13, %p821_p4 }
 0x1a0   : > { %p819_p6 = pneg %p818_p7 }
 0x1a1   : > { %p825_p5 = por %p824_p11, %p823_p8 }
 0x1a3   : > { %p826_p2 = pnand %p825_p5, %p819_p6 }
 0x1a5   : > { %829 = shalt.err (!%p826_p2)
}
 0x1a6   : > { %653 = dma.vmem_to_hbm [thread:$0]  (%p1197_p12), %s1129_s8, 128, %s1127_s27, %s465_s19  }
 0x1a7 PF: > { %p673_p0 = scmp.ge.s32.totalorder %s872_s24, 2  ;;  %s490_s15 = sand.u32 1, %s860_s21  }
 0x1a8   : > { %p1198_p9 = scmp.ne.s32.totalorder %s1188_s13, 0  ;;  %s491_s10 = scalar_lea.sflag [#allocation4], %s490_s15 }
 0x1aa   : > { %p667_p1 = pnand %p673_p0, %p1198_p9 }
 0x1ac   : > { %855 = dma.done.wait (!%p667_p1), %s491_s10, 128  }
 0x1ad   : > { %857 = vsyncadd (!%p667_p1), %s491_s10, 4294967168  ;;  %p20_p3 = scmp.ge.s32.totalorder %s939_s25, 5   ;;  %s1199_s21 = smov %s864_s22 }
 0x1ae   : > { %s1200_s22 = smov %s868_s23  ;;  %s1201_s23 = smov %s949_s28 }
 0x1af   : > { %s1202_s24 = smov %s939_s25  ;;  %22 = sbr.rel (!%p20_p3) target bundleno = 9 (0x9), region = 114 }
 0x1b6   :  { %496 = vsyncpa [#allocation3], 1 }
 0x1b7   :  { %498 = vsyncpa [#allocation3 + $0x1], 1 }
 0x1b8   :  { %499 = vsyncpa [#allocation6], 1 }
 0x1b9   :  { %501 = vsyncpa [#allocation6 + $0x1], 1 }
 0x1ba   :  { %502 = vsyncpa [#allocation4], 1 }
 0x1bb   :  { %504 = vsyncpa [#allocation4 + $0x1], 1 }

</bundles_post_ra>
